<compile_context>
chip_gen: v6e
topology: v6e:2x2x1
jax: 0.10.0
libtpu: 0.0.40
codegen_flags: <defaults>
</compile_context>

<pallas_src>
import functools

import jax
import jax.numpy as jnp
from jax.experimental import pallas as pl
from jax.experimental.pallas import tpu as pltpu

LANE = 128   # TPU lane width; feature dims are zero-padded to this.
SUB = 8      # TPU sublane width; row dims are padded to multiples of this.


# ----------------------------------------------------------------------------
# Fused forward kernel
# ----------------------------------------------------------------------------

def _fused_forward_kernel(*refs, n_layers):
    """embedding -> in-feat dropout -> L x SAGEConv(mean, ReLU, residual)
       -> global mean pool -> fc dropout -> MLPReadout, all in one kernel."""
    (x_ref, a_ref, pool_ref, m0_ref, m1_ref, emb_w_ref, emb_b_ref) = refs[:7]
    layer_refs = refs[7:7 + 3 * n_layers]
    (w0_ref, b0_ref, w1_ref, b1_ref, w2_ref, b2_ref) = refs[
        7 + 3 * n_layers: 7 + 3 * n_layers + 6]
    o_ref = refs[-1]

    # embedding_h + in_feat_dropout (mask already scaled by 1/(1-p)).
    h = jnp.dot(x_ref[...], emb_w_ref[...],
                preferred_element_type=jnp.float32) + emb_b_ref[...]
    h = h * m0_ref[...]

    a = a_ref[...]
    # SAGEConv stack (mean aggregator, ReLU, residual).  Two K=128 dots + add
    # per layer (no in-kernel concatenate -> no extra VMEM copy).
    for l in range(n_layers):
        ws_ref, wn_ref, b_ref = layer_refs[3 * l: 3 * l + 3]
        h_neigh = jnp.dot(a, h, preferred_element_type=jnp.float32)
        y = (jnp.dot(h, ws_ref[...], preferred_element_type=jnp.float32)
             + jnp.dot(h_neigh, wn_ref[...], preferred_element_type=jnp.float32)
             + b_ref[...])
        h = jnp.maximum(y, 0.0) + h   # residual: hidden_dim == out_dim

    # readout == 'mean': global_mean_pool as one tiny matmul, fused here.
    hg = jnp.dot(pool_ref[...], h, preferred_element_type=jnp.float32)

    # dropout_fc + MLPReadout (out_dim -> out_dim/2 -> out_dim/4 -> n_classes).
    hg = hg * m1_ref[...]
    hg = jnp.maximum(jnp.dot(hg, w0_ref[...], preferred_element_type=jnp.float32)
                     + b0_ref[...], 0.0)
    hg = jnp.maximum(jnp.dot(hg, w1_ref[...], preferred_element_type=jnp.float32)
                     + b1_ref[...], 0.0)
    logits = (jnp.dot(hg, w2_ref[...], preferred_element_type=jnp.float32)
              + b2_ref[...])
    o_ref[...] = logits.astype(o_ref.dtype)   # lane-dense (G_pad, 128) store


# ----------------------------------------------------------------------------
# Plain-JAX glue: graph structure -> dense operators (index plumbing only)
# ----------------------------------------------------------------------------

def build_mean_adj(edge_index, num_nodes):
    """A_mean[i, j] = 1/deg_in(i) if there is an edge j -> i (PyG src->dst)."""
    src, dst = edge_index[0], edge_index[1]
    adj = jnp.zeros((num_nodes, num_nodes), jnp.float32).at[dst, src].add(1.0)
    deg = jnp.maximum(adj.sum(axis=1, keepdims=True), 1.0)
    return adj / deg


def build_mean_pool(batch, num_graphs, num_nodes):
    """P[g, i] = 1/|V_g| if batch[i] == g  (global_mean_pool as a matmul)."""
    p = jnp.zeros((num_graphs, num_nodes), jnp.float32)
    p = p.at[batch, jnp.arange(num_nodes)].set(1.0)
    cnt = jnp.maximum(p.sum(axis=1, keepdims=True), 1.0)
    return p / cnt


def _ru(n, m):
    return -(-n // m) * m


def _pad2(x, rows, cols):
    return jnp.pad(x, ((0, rows - x.shape[0]), (0, cols - x.shape[1])))


# ----------------------------------------------------------------------------
# Parameter init (deterministic, synthetic, PyTorch-Linear-style) + forward
# ----------------------------------------------------------------------------

def init_params(key, in_dim, hidden_dim, out_dim, n_classes, n_layers):
    assert hidden_dim == out_dim, "residual=True requires hidden_dim == out_dim"

    def lin(k, fan_in, fan_out):
        kw, kb = jax.random.split(k)
        bound = 1.0 / jnp.sqrt(jnp.float32(fan_in))
        w = jax.random.uniform(kw, (fan_in, fan_out), jnp.float32, -bound, bound)
        b = jax.random.uniform(kb, (1, fan_out), jnp.float32, -bound, bound)
        return w, b

    keys = jax.random.split(key, 16)
    params = {}
    params["emb_w"], params["emb_b"] = lin(keys[0], in_dim, hidden_dim)

    layers = []
    for l in range(n_layers):
        d_out = hidden_dim if l < n_layers - 1 else out_dim
        ws, _ = lin(keys[1 + 2 * l], hidden_dim, d_out)
        wn, b = lin(keys[2 + 2 * l], hidden_dim, d_out)
        layers.append({"w_self": ws, "w_neigh": wn, "b": b})
    params["sage_layers"] = layers

    # MLPReadout(out_dim, n_classes): two halving ReLU layers + classifier.
    d0, d1, d2 = out_dim, out_dim // 2, out_dim // 4
    params["mlp0_w"], params["mlp0_b"] = lin(keys[10], d0, d1)
    params["mlp1_w"], params["mlp1_b"] = lin(keys[11], d1, d2)
    params["mlp2_w"], params["mlp2_b"] = lin(keys[12], d2, n_classes)
    return params


def sage_mc_dropout_forward(params, x, edge_index, batch, num_graphs,
                            dropout_rate, key):
    num_nodes, in_dim = x.shape
    n_layers = len(params["sage_layers"])
    n_classes = params["mlp2_w"].shape[1]

    n_pad = _ru(num_nodes, SUB)      # sublane-aligned node count
    g_pad = _ru(num_graphs, SUB)     # sublane-aligned graph count
    in_pad = _ru(in_dim, LANE)       # lane-dense input feature dim

    # Graph structure -> dense operators (not the compute hot path).
    a_mean = build_mean_adj(edge_index, num_nodes)
    pool = build_mean_pool(batch, num_graphs, num_nodes)

    x_p = _pad2(x.astype(jnp.float32), n_pad, in_pad)
    a_p = _pad2(a_mean, n_pad, n_pad)
    pool_p = _pad2(pool, g_pad, n_pad)

    # MC-dropout masks, drawn per forward call (vary `key` per MC sample),
    # pre-scaled by 1/(1-p) (inverted dropout) -> single VPU mul in-kernel.
    # TODO(synk): could use in-kernel pltpu.prng_* instead; masks are tiny so
    # the HBM traffic saved is negligible and host masks keep it portable.
    k0, k1 = jax.random.split(key)
    if dropout_rate > 0.0:
        scale = 1.0 / (1.0 - dropout_rate)
        m0 = jax.random.bernoulli(
            k0, 1.0 - dropout_rate, (n_pad, LANE)).astype(jnp.float32) * scale
        m1 = jax.random.bernoulli(
            k1, 1.0 - dropout_rate, (g_pad, LANE)).astype(jnp.float32) * scale
    else:
        m0 = jnp.ones((n_pad, LANE), jnp.float32)
        m1 = jnp.ones((g_pad, LANE), jnp.float32)

    # Lane-dense (128-wide), zero-padded weights / biases.
    emb_w = _pad2(params["emb_w"], in_pad, LANE)
    emb_b = _pad2(params["emb_b"], 1, LANE)

    layer_inputs = []
    for layer in params["sage_layers"]:
        layer_inputs += [_pad2(layer["w_self"], LANE, LANE),
                         _pad2(layer["w_neigh"], LANE, LANE),
                         _pad2(layer["b"], 1, LANE)]

    w0 = _pad2(params["mlp0_w"], LANE, LANE)
    b0 = _pad2(params["mlp0_b"], 1, LANE)
    w1 = _pad2(params["mlp1_w"], LANE, LANE)
    b1 = _pad2(params["mlp1_b"], 1, LANE)
    w2 = _pad2(params["mlp2_w"], LANE, LANE)
    b2 = _pad2(params["mlp2_b"], 1, LANE)

    inputs = [x_p, a_p, pool_p, m0, m1, emb_w, emb_b, *layer_inputs,
              w0, b0, w1, b1, w2, b2]

    kernel = functools.partial(_fused_forward_kernel, n_layers=n_layers)
    out_padded = pl.pallas_call(
        kernel,
        out_shape=jax.ShapeDtypeStruct((g_pad, LANE), jnp.float32),
        in_specs=[pl.BlockSpec(memory_space=pltpu.MemorySpace.VMEM)] * len(inputs),
        out_specs=pl.BlockSpec(memory_space=pltpu.MemorySpace.VMEM),
    )(*inputs)
    # Lane-dense store in-kernel; final tiny slice done outside the kernel.
    return out_padded[:num_graphs, :n_classes]


# ----------------------------------------------------------------------------
# Main
# ----------------------------------------------------------------------------

if __name__ == "__main__":
    in_dim = 16
    hidden_dim = 32
    out_dim = 32
    n_classes = 4
    n_layers = 2            # net_params['L']
    in_feat_dropout = 0.1
    num_graphs = 3
    nodes_per_graph = 8
    num_nodes = num_graphs * nodes_per_graph

    key = jax.random.PRNGKey(0)
    k_x, k_p, k_drop = jax.random.split(key, 3)

    # Node features [N_nodes, in_dim] (node-major, features on the lane axis).
    x = jax.random.normal(k_x, (num_nodes, in_dim), dtype=jnp.float32)

    # Deterministic graph: per-graph bidirectional ring.
    src_list, dst_list = [], []
    for g in range(num_graphs):
        base = g * nodes_per_graph
        for i in range(nodes_per_graph):
            a = base + i
            b = base + (i + 1) % nodes_per_graph
            src_list += [a, b]
            dst_list += [b, a]
    edge_index = jnp.array([src_list, dst_list], dtype=jnp.int32)   # [2, E]

    batch = jnp.repeat(jnp.arange(num_graphs, dtype=jnp.int32), nodes_per_graph)

    params = init_params(k_p, in_dim, hidden_dim, out_dim, n_classes, n_layers)

    logits = sage_mc_dropout_forward(params, x, edge_index, batch, num_graphs,
                                     in_feat_dropout, k_drop)
    logits = jax.block_until_ready(logits)
    assert logits.shape == (num_graphs, n_classes)
    assert bool(jnp.all(jnp.isfinite(logits)))
    print("KERNEL_OK")
</pallas_src>

<mosaic_0001>
module attributes {stable_mosaic.version = 11 : i64} {
  func.func @_fused_forward_kernel(%arg0: memref<24x128xf32, #tpu.memory_space<vmem>>, %arg1: memref<24x24xf32, #tpu.memory_space<vmem>>, %arg2: memref<8x24xf32, #tpu.memory_space<vmem>>, %arg3: memref<24x128xf32, #tpu.memory_space<vmem>>, %arg4: memref<8x128xf32, #tpu.memory_space<vmem>>, %arg5: memref<128x128xf32, #tpu.memory_space<vmem>>, %arg6: memref<1x128xf32, #tpu.memory_space<vmem>>, %arg7: memref<128x128xf32, #tpu.memory_space<vmem>>, %arg8: memref<128x128xf32, #tpu.memory_space<vmem>>, %arg9: memref<1x128xf32, #tpu.memory_space<vmem>>, %arg10: memref<128x128xf32, #tpu.memory_space<vmem>>, %arg11: memref<128x128xf32, #tpu.memory_space<vmem>>, %arg12: memref<1x128xf32, #tpu.memory_space<vmem>>, %arg13: memref<128x128xf32, #tpu.memory_space<vmem>>, %arg14: memref<1x128xf32, #tpu.memory_space<vmem>>, %arg15: memref<128x128xf32, #tpu.memory_space<vmem>>, %arg16: memref<1x128xf32, #tpu.memory_space<vmem>>, %arg17: memref<128x128xf32, #tpu.memory_space<vmem>>, %arg18: memref<1x128xf32, #tpu.memory_space<vmem>>, %arg19: memref<8x128xf32, #tpu.memory_space<vmem>>) attributes {dimension_semantics = [], scalar_prefetch = 0 : i64, scratch_operands = 0 : i64, tpu.core_type = #tpu.core_type<tc>} {
    %c0 = arith.constant 0 : index
    %c0_0 = arith.constant 0 : index
    %0 = vector.load %arg0[%c0, %c0_0] : memref<24x128xf32, #tpu.memory_space<vmem>>, vector<24x128xf32>
    %c0_1 = arith.constant 0 : index
    %c0_2 = arith.constant 0 : index
    %1 = vector.load %arg5[%c0_1, %c0_2] : memref<128x128xf32, #tpu.memory_space<vmem>>, vector<128x128xf32>
    %cst = arith.constant dense<0.000000e+00> : vector<24x128xf32>
    %2 = tpu.matmul %0, %1, %cst {dimension_numbers = #tpu.dot_dimension_numbers<[1], [0], [0], [1], [0, 0, 1, 1], [], []>} : vector<24x128xf32>, vector<128x128xf32>, vector<24x128xf32> -> vector<24x128xf32>
    %c0_3 = arith.constant 0 : index
    %c0_4 = arith.constant 0 : index
    %3 = vector.load %arg6[%c0_3, %c0_4] : memref<1x128xf32, #tpu.memory_space<vmem>>, vector<1x128xf32>
    %4 = vector.broadcast %3 : vector<1x128xf32> to vector<24x128xf32>
    %5 = arith.addf %2, %4 : vector<24x128xf32>
    %c0_5 = arith.constant 0 : index
    %c0_6 = arith.constant 0 : index
    %6 = vector.load %arg3[%c0_5, %c0_6] : memref<24x128xf32, #tpu.memory_space<vmem>>, vector<24x128xf32>
    %7 = arith.mulf %5, %6 : vector<24x128xf32>
    %c0_7 = arith.constant 0 : index
    %c0_8 = arith.constant 0 : index
    %8 = vector.load %arg1[%c0_7, %c0_8] : memref<24x24xf32, #tpu.memory_space<vmem>>, vector<24x24xf32>
    %cst_9 = arith.constant dense<0.000000e+00> : vector<24x128xf32>
    %9 = tpu.matmul %8, %7, %cst_9 {dimension_numbers = #tpu.dot_dimension_numbers<[1], [0], [0], [1], [0, 0, 1, 1], [], []>} : vector<24x24xf32>, vector<24x128xf32>, vector<24x128xf32> -> vector<24x128xf32>
    %c0_10 = arith.constant 0 : index
    %c0_11 = arith.constant 0 : index
    %10 = vector.load %arg7[%c0_10, %c0_11] : memref<128x128xf32, #tpu.memory_space<vmem>>, vector<128x128xf32>
    %cst_12 = arith.constant dense<0.000000e+00> : vector<24x128xf32>
    %11 = tpu.matmul %7, %10, %cst_12 {dimension_numbers = #tpu.dot_dimension_numbers<[1], [0], [0], [1], [0, 0, 1, 1], [], []>} : vector<24x128xf32>, vector<128x128xf32>, vector<24x128xf32> -> vector<24x128xf32>
    %c0_13 = arith.constant 0 : index
    %c0_14 = arith.constant 0 : index
    %12 = vector.load %arg8[%c0_13, %c0_14] : memref<128x128xf32, #tpu.memory_space<vmem>>, vector<128x128xf32>
    %cst_15 = arith.constant dense<0.000000e+00> : vector<24x128xf32>
    %13 = tpu.matmul %9, %12, %cst_15 {dimension_numbers = #tpu.dot_dimension_numbers<[1], [0], [0], [1], [0, 0, 1, 1], [], []>} : vector<24x128xf32>, vector<128x128xf32>, vector<24x128xf32> -> vector<24x128xf32>
    %14 = arith.addf %11, %13 : vector<24x128xf32>
    %c0_16 = arith.constant 0 : index
    %c0_17 = arith.constant 0 : index
    %15 = vector.load %arg9[%c0_16, %c0_17] : memref<1x128xf32, #tpu.memory_space<vmem>>, vector<1x128xf32>
    %16 = vector.broadcast %15 : vector<1x128xf32> to vector<24x128xf32>
    %17 = arith.addf %14, %16 : vector<24x128xf32>
    %cst_18 = arith.constant 0.000000e+00 : f32
    %18 = vector.broadcast %cst_18 : f32 to vector<24x128xf32>
    %19 = arith.maximumf %17, %18 : vector<24x128xf32>
    %20 = arith.addf %19, %7 : vector<24x128xf32>
    %cst_19 = arith.constant dense<0.000000e+00> : vector<24x128xf32>
    %21 = tpu.matmul %8, %20, %cst_19 {dimension_numbers = #tpu.dot_dimension_numbers<[1], [0], [0], [1], [0, 0, 1, 1], [], []>} : vector<24x24xf32>, vector<24x128xf32>, vector<24x128xf32> -> vector<24x128xf32>
    %c0_20 = arith.constant 0 : index
    %c0_21 = arith.constant 0 : index
    %22 = vector.load %arg10[%c0_20, %c0_21] : memref<128x128xf32, #tpu.memory_space<vmem>>, vector<128x128xf32>
    %cst_22 = arith.constant dense<0.000000e+00> : vector<24x128xf32>
    %23 = tpu.matmul %20, %22, %cst_22 {dimension_numbers = #tpu.dot_dimension_numbers<[1], [0], [0], [1], [0, 0, 1, 1], [], []>} : vector<24x128xf32>, vector<128x128xf32>, vector<24x128xf32> -> vector<24x128xf32>
    %c0_23 = arith.constant 0 : index
    %c0_24 = arith.constant 0 : index
    %24 = vector.load %arg11[%c0_23, %c0_24] : memref<128x128xf32, #tpu.memory_space<vmem>>, vector<128x128xf32>
    %cst_25 = arith.constant dense<0.000000e+00> : vector<24x128xf32>
    %25 = tpu.matmul %21, %24, %cst_25 {dimension_numbers = #tpu.dot_dimension_numbers<[1], [0], [0], [1], [0, 0, 1, 1], [], []>} : vector<24x128xf32>, vector<128x128xf32>, vector<24x128xf32> -> vector<24x128xf32>
    %26 = arith.addf %23, %25 : vector<24x128xf32>
    %c0_26 = arith.constant 0 : index
    %c0_27 = arith.constant 0 : index
    %27 = vector.load %arg12[%c0_26, %c0_27] : memref<1x128xf32, #tpu.memory_space<vmem>>, vector<1x128xf32>
    %28 = vector.broadcast %27 : vector<1x128xf32> to vector<24x128xf32>
    %29 = arith.addf %26, %28 : vector<24x128xf32>
    %cst_28 = arith.constant 0.000000e+00 : f32
    %30 = vector.broadcast %cst_28 : f32 to vector<24x128xf32>
    %31 = arith.maximumf %29, %30 : vector<24x128xf32>
    %32 = arith.addf %31, %20 : vector<24x128xf32>
    %c0_29 = arith.constant 0 : index
    %c0_30 = arith.constant 0 : index
    %33 = vector.load %arg2[%c0_29, %c0_30] : memref<8x24xf32, #tpu.memory_space<vmem>>, vector<8x24xf32>
    %cst_31 = arith.constant dense<0.000000e+00> : vector<8x128xf32>
    %34 = tpu.matmul %33, %32, %cst_31 {dimension_numbers = #tpu.dot_dimension_numbers<[1], [0], [0], [1], [0, 0, 1, 1], [], []>} : vector<8x24xf32>, vector<24x128xf32>, vector<8x128xf32> -> vector<8x128xf32>
    %c0_32 = arith.constant 0 : index
    %c0_33 = arith.constant 0 : index
    %35 = vector.load %arg4[%c0_32, %c0_33] : memref<8x128xf32, #tpu.memory_space<vmem>>, vector<8x128xf32>
    %36 = arith.mulf %34, %35 : vector<8x128xf32>
    %c0_34 = arith.constant 0 : index
    %c0_35 = arith.constant 0 : index
    %37 = vector.load %arg13[%c0_34, %c0_35] : memref<128x128xf32, #tpu.memory_space<vmem>>, vector<128x128xf32>
    %cst_36 = arith.constant dense<0.000000e+00> : vector<8x128xf32>
    %38 = tpu.matmul %36, %37, %cst_36 {dimension_numbers = #tpu.dot_dimension_numbers<[1], [0], [0], [1], [0, 0, 1, 1], [], []>} : vector<8x128xf32>, vector<128x128xf32>, vector<8x128xf32> -> vector<8x128xf32>
    %c0_37 = arith.constant 0 : index
    %c0_38 = arith.constant 0 : index
    %39 = vector.load %arg14[%c0_37, %c0_38] : memref<1x128xf32, #tpu.memory_space<vmem>>, vector<1x128xf32>
    %40 = vector.broadcast %39 : vector<1x128xf32> to vector<8x128xf32>
    %41 = arith.addf %38, %40 : vector<8x128xf32>
    %cst_39 = arith.constant 0.000000e+00 : f32
    %42 = vector.broadcast %cst_39 : f32 to vector<8x128xf32>
    %43 = arith.maximumf %41, %42 : vector<8x128xf32>
    %c0_40 = arith.constant 0 : index
    %c0_41 = arith.constant 0 : index
    %44 = vector.load %arg15[%c0_40, %c0_41] : memref<128x128xf32, #tpu.memory_space<vmem>>, vector<128x128xf32>
    %cst_42 = arith.constant dense<0.000000e+00> : vector<8x128xf32>
    %45 = tpu.matmul %43, %44, %cst_42 {dimension_numbers = #tpu.dot_dimension_numbers<[1], [0], [0], [1], [0, 0, 1, 1], [], []>} : vector<8x128xf32>, vector<128x128xf32>, vector<8x128xf32> -> vector<8x128xf32>
    %c0_43 = arith.constant 0 : index
    %c0_44 = arith.constant 0 : index
    %46 = vector.load %arg16[%c0_43, %c0_44] : memref<1x128xf32, #tpu.memory_space<vmem>>, vector<1x128xf32>
    %47 = vector.broadcast %46 : vector<1x128xf32> to vector<8x128xf32>
    %48 = arith.addf %45, %47 : vector<8x128xf32>
    %cst_45 = arith.constant 0.000000e+00 : f32
    %49 = vector.broadcast %cst_45 : f32 to vector<8x128xf32>
    %50 = arith.maximumf %48, %49 : vector<8x128xf32>
    %c0_46 = arith.constant 0 : index
    %c0_47 = arith.constant 0 : index
    %51 = vector.load %arg17[%c0_46, %c0_47] : memref<128x128xf32, #tpu.memory_space<vmem>>, vector<128x128xf32>
    %cst_48 = arith.constant dense<0.000000e+00> : vector<8x128xf32>
    %52 = tpu.matmul %50, %51, %cst_48 {dimension_numbers = #tpu.dot_dimension_numbers<[1], [0], [0], [1], [0, 0, 1, 1], [], []>} : vector<8x128xf32>, vector<128x128xf32>, vector<8x128xf32> -> vector<8x128xf32>
    %c0_49 = arith.constant 0 : index
    %c0_50 = arith.constant 0 : index
    %53 = vector.load %arg18[%c0_49, %c0_50] : memref<1x128xf32, #tpu.memory_space<vmem>>, vector<1x128xf32>
    %54 = vector.broadcast %53 : vector<1x128xf32> to vector<8x128xf32>
    %55 = arith.addf %52, %54 : vector<8x128xf32>
    %c0_51 = arith.constant 0 : index
    %c0_52 = arith.constant 0 : index
    %56 = vector.load %arg19[%c0_51, %c0_52] : memref<8x128xf32, #tpu.memory_space<vmem>>, vector<8x128xf32>
    tpu.vector_store %arg19[%c0_51, %c0_52], %55 {strides = array<i32>} : memref<8x128xf32, #tpu.memory_space<vmem>>, vector<8x128xf32>,
    return
  }
}

</mosaic_0001>

<bundles_post_ra>
// kernel: tpu_custom_call.1
= control target key start
LH: loop header
LB: loop body
LE: loop exit
PB: predicated region body
PF: predicated region fallthrough
CT: control target
= control target key end

     0   :  { %s2609_s0 = inlined_call_operand.hbm [shape: f32[24,128], index: 0, kind: input, shape index: {}]   ;;  %s2610_s1 = inlined_call_operand.hbm [shape: f32[24,24], index: 1, kind: input, shape index: {}]   ;;  %s2611_s2 = inlined_call_operand.hbm [shape: f32[8,24], index: 2, kind: input, shape index: {}]   ;;  %s2612_s3 = inlined_call_operand.hbm [shape: f32[24,128], index: 3, kind: input, shape index: {}]   ;;  %s2613_s4 = inlined_call_operand.hbm [shape: f32[8,128], index: 4, kind: input, shape index: {}]   ;;  %s2614_s5 = inlined_call_operand.hbm [shape: f32[128,128], index: 5, kind: input, shape index: {}]   ;;  %s2615_s6 = inlined_call_operand.vmem [shape: f32[1,128], index: 6, kind: input, shape index: {}]   ;;  %s2616_s7 = inlined_call_operand.hbm [shape: f32[128,128], index: 7, kind: input, shape index: {}]   ;;  %s2617_s8 = inlined_call_operand.hbm [shape: f32[128,128], index: 8, kind: input, shape index: {}]   ;;  %s2618_s9 = inlined_call_operand.vmem [shape: f32[1,128], index: 9, kind: input, shape index: {}]   ;;  %s2619_s10 = inlined_call_operand.hbm [shape: f32[128,128], index: 10, kind: input, shape index: {}]   ;;  %s2620_s11 = inlined_call_operand.hbm [shape: f32[128,128], index: 11, kind: input, shape index: {}]   ;;  %s2621_s12 = inlined_call_operand.vmem [shape: f32[1,128], index: 12, kind: input, shape index: {}]   ;;  %s2622_s13 = inlined_call_operand.hbm [shape: f32[128,128], index: 13, kind: input, shape index: {}]   ;;  %s2623_s14 = inlined_call_operand.vmem [shape: f32[1,128], index: 14, kind: input, shape index: {}]   ;;  %s2624_s15 = inlined_call_operand.hbm [shape: f32[128,128], index: 15, kind: input, shape index: {}]   ;;  %s2625_s16 = inlined_call_operand.vmem [shape: f32[1,128], index: 16, kind: input, shape index: {}]   ;;  %s2626_s17 = inlined_call_operand.hbm [shape: f32[128,128], index: 17, kind: input, shape index: {}]   ;;  %s2627_s18 = inlined_call_operand.vmem [shape: f32[1,128], index: 18, kind: input, shape index: {}]   ;;  %s2628_s19 = inlined_call_operand.hbm [shape: f32[8,128], index: 19, kind: output, shape index: {}]  }
   0x1   :  { %2629 = sst [smem:[#allocation32_spill]] %s2609_s0 }
   0x2   :  { %2630 = sst [smem:[#allocation33_spill]] %s2610_s1 }
   0x3   :  { %2631 = sst [smem:[#allocation34_spill]] %s2611_s2 }
   0x4   :  { %2632 = sst [smem:[#allocation35_spill]] %s2612_s3 }
   0x5   :  { %24 = vsyncpa [#allocation3], 0 }
   0x6   :  { %25 = vsyncpa [#allocation6], 0 }
   0x7   :  { %26 = vsyncpa [#allocation9], 0 }
   0x8   :  { %27 = vsyncpa [#allocation12], 0 }
   0x9   :  { %28 = vsyncpa [#allocation15], 0 }
   0xa   :  { %29 = vsyncpa [#allocation18], 0 }
   0xb   :  { %30 = vsyncpa [#allocation21], 0 }
   0xc   :  { %31 = vsyncpa [#allocation4], 0  ;;  %s2153_s0 = smov [#allocation5]   ;;  %s2154_s20 = smov [#allocation8]  }
   0xd   :  { %s49_s30 = sshll.u32 %s2153_s0, 4  ;;  %s71_s21 = sshll.u32 %s2154_s20, 4  ;;  %s50_s30 = int_to_ptr.vmem [resolvable:$true] %s49_s30  ;;  %s72_s21 = int_to_ptr.vmem [resolvable:$true] %s71_s21 }
   0xe   :  { %s1865_s1 = scalar_lea.vmem %s50_s30, 384  ;;  %p1870_p1 = scmp.lt.s32.totalorder %s50_s30, %s50_s30 }
   0xf   :  { %p1866_p0 = scmp.ne.s32.totalorder %s50_s30, %s1865_s1  ;;  %p1871_p2 = scmp.lt.s32.totalorder %s1865_s1, %s1865_s1 }
  0x11   :  { %p1872_p3 = por %p1871_p2, %p1870_p1 }
  0x13   :  { %p1873_p4 = pnand %p1872_p3, %p1866_p0 }
  0x15   :  { %1876 = shalt.err (!%p1873_p4)
}
  0x16   :  { %s2155_s22 = smov 128   ;;  %s2156_s2 = smov 8  }
  0x17   :  { %s2633_s25 = sld [smem:[#allocation33_spill]]  ;;  %s1885_s3 = scalar_lea.vmem %s72_s21, 384 }
  0x18   :  { %p1886_p5 = scmp.ne.s32.totalorder %s72_s21, %s1885_s3  ;;  %p1890_p6 = scmp.lt.s32.totalorder %s72_s21, %s72_s21 }
  0x19   :  { %p1891_p7 = scmp.lt.s32.totalorder %s1885_s3, %s1885_s3 }
  0x1b   :  { %p1892_p8 = por %p1891_p7, %p1890_p6 }
  0x1d   :  { %55 = dma.hbm_to_vmem [thread:$0]  %s2633_s25, 384, %s50_s30, [#allocation6], %s2155_s22, %s2155_s22, %s2156_s2  }
  0x1e   :  { %p1893_p9 = pnand %p1892_p8, %p1886_p5 }
  0x20   :  { %1896 = shalt.err (!%p1893_p9)
}
  0x21   :  { %s2634_s28 = sld [smem:[#allocation35_spill]]  ;;  %s2157_s29 = smov [#allocation11]  }
  0x22   :  { %s93_s0 = sshll.u32 %s2157_s29, 4  ;;  %s2158_s20 = smov [#allocation14]   ;;  %s94_s0 = int_to_ptr.vmem [resolvable:$true] %s93_s0 }
  0x23   :  { %s119_s1 = sshll.u32 %s2158_s20, 4  ;;  %s1905_s30 = scalar_lea.vmem %s94_s0, 2048  ;;  %s120_s1 = int_to_ptr.vmem [resolvable:$true] %s119_s1 }
  0x24   :  { %p1906_p10 = scmp.ne.s32.totalorder %s94_s0, %s1905_s30  ;;  %p1910_p11 = scmp.lt.s32.totalorder %s94_s0, %s94_s0 }
  0x25   :  { %p1911_p12 = scmp.lt.s32.totalorder %s1905_s30, %s1905_s30 }
  0x27   :  { %77 = dma.hbm_to_vmem [thread:$0]  %s2634_s28, 384, %s72_s21, [#allocation9], %s2155_s22, %s2155_s22, %s2156_s2  }
  0x28   :  { %p1912_p13 = por %p1911_p12, %p1910_p11 }
  0x2a   :  { %p1913_p0 = pnand %p1912_p13, %p1906_p10 }
  0x2c   :  { %1916 = shalt.err (!%p1913_p0)
}
  0x2d   :  { %99 = dma.hbm_to_vmem [thread:$0]  %s2614_s5, 2048, %s94_s0, [#allocation12], %s2155_s22, %s2155_s22, %s2156_s2  }
  0x2e   :  { %s1925_s21 = scalar_lea.vmem %s120_s1, 2048  ;;  %p1930_p2 = scmp.lt.s32.totalorder %s120_s1, %s120_s1 }
  0x2f   :  { %p1926_p1 = scmp.ne.s32.totalorder %s120_s1, %s1925_s21  ;;  %p1931_p3 = scmp.lt.s32.totalorder %s1925_s21, %s1925_s21 }
  0x31   :  { %p1932_p4 = por %p1931_p3, %p1930_p2 }
  0x33   :  { %p1933_p5 = pnand %p1932_p4, %p1926_p1 }
  0x35   :  { %1936 = shalt.err (!%p1933_p5)
}
  0x36   :  { %125 = dma.hbm_to_vmem [thread:$0]  %s2617_s8, 2048, %s120_s1, [#allocation15], %s2155_s22, %s2155_s22, %s2156_s2  }
  0x37   :  { %s2159_s26 = smov [#allocation17]   ;;  %s2160_s28 = smov [#allocation20]  }
  0x38   :  { %s145_s27 = sshll.u32 %s2159_s26, 4  ;;  %s173_s29 = sshll.u32 %s2160_s28, 4  ;;  %s146_s27 = int_to_ptr.vmem [resolvable:$true] %s145_s27  ;;  %s174_s29 = int_to_ptr.vmem [resolvable:$true] %s173_s29 }
  0x39   :  { %s1945_s5 = scalar_lea.vmem %s146_s27, 2048  ;;  %p1950_p7 = scmp.lt.s32.totalorder %s146_s27, %s146_s27 }
  0x3a   :  { %p1946_p6 = scmp.ne.s32.totalorder %s146_s27, %s1945_s5  ;;  %p1951_p8 = scmp.lt.s32.totalorder %s1945_s5, %s1945_s5 }
  0x3c   :  { %p1952_p9 = por %p1951_p8, %p1950_p7 }
  0x3e   :  { %p1953_p10 = pnand %p1952_p9, %p1946_p6 }
  0x40   :  { %1956 = shalt.err (!%p1953_p10)
}
  0x41   :  { %151 = dma.hbm_to_vmem [thread:$0]  %s2620_s11, 2048, %s146_s27, [#allocation18], %s2155_s22, %s2155_s22, %s2156_s2  }
  0x42   :  { %s1965_s8 = scalar_lea.vmem %s174_s29, 2048  ;;  %p1970_p12 = scmp.lt.s32.totalorder %s174_s29, %s174_s29 }
  0x43   :  { %p1966_p11 = scmp.ne.s32.totalorder %s174_s29, %s1965_s8  ;;  %p1971_p13 = scmp.lt.s32.totalorder %s1965_s8, %s1965_s8 }
  0x45   :  { %p1972_p0 = por %p1971_p13, %p1970_p12 }
  0x47   :  { %p1973_p1 = pnand %p1972_p0, %p1966_p11 }
  0x49   :  { %1976 = shalt.err (!%p1973_p1)
}
  0x4a   :  { %179 = dma.hbm_to_vmem [thread:$0]  %s2624_s15, 2048, %s174_s29, [#allocation21], %s2155_s22, %s2155_s22, %s2156_s2  }
  0x4b   :  { %s2161_s23 = smov [#allocation2]   ;;  %s2162_s21 = smov [#allocation7]  }
  0x4c   :  { %s37_s24 = sshll.u32 %s2161_s23, 4  ;;  %s62_s25 = sshll.u32 %s2162_s21, 4  ;;  %s38_s24 = int_to_ptr.vmem [resolvable:$true] %s37_s24  ;;  %s63_s25 = int_to_ptr.vmem [resolvable:$true] %s62_s25 }
  0x4d   :  { %s1985_s11 = scalar_lea.vmem %s38_s24, 384  ;;  %p1990_p3 = scmp.lt.s32.totalorder %s38_s24, %s38_s24 }
  0x4e   :  { %p1986_p2 = scmp.ne.s32.totalorder %s38_s24, %s1985_s11  ;;  %p1991_p4 = scmp.lt.s32.totalorder %s1985_s11, %s1985_s11 }
  0x50   :  { %p1992_p5 = por %p1991_p4, %p1990_p3 }
  0x52   :  { %p1993_p6 = pnand %p1992_p5, %p1986_p2 }
  0x54   :  { %1996 = shalt.err (!%p1993_p6)
}
  0x55   :  { %s2635_s27 = sld [smem:[#allocation32_spill]]  ;;  %s2005_s15 = scalar_lea.vmem %s63_s25, 128 }
  0x56   :  { %p2006_p7 = scmp.ne.s32.totalorder %s63_s25, %s2005_s15  ;;  %p2010_p8 = scmp.lt.s32.totalorder %s63_s25, %s63_s25 }
  0x57   :  { %p2011_p9 = scmp.lt.s32.totalorder %s2005_s15, %s2005_s15 }
  0x59   :  { %p2012_p10 = por %p2011_p9, %p2010_p8 }
  0x5b   :  { %43 = dma.hbm_to_vmem [thread:$0]  %s2635_s27, 384, %s38_s24, [#allocation3], %s2155_s22, %s2155_s22, %s2156_s2  }
  0x5c   :  { %p2013_p11 = pnand %p2012_p10, %p2006_p7 }
  0x5e   :  { %2016 = shalt.err (!%p2013_p11)
}
  0x5f   :  { %s2636_s5 = sld [smem:[#allocation34_spill]]  ;;  %s2163_s0 = smov [#allocation10]  }
  0x60   :  { %s84_s20 = sshll.u32 %s2163_s0, 4  ;;  %s2164_s8 = smov [#allocation13]   ;;  %s85_s20 = int_to_ptr.vmem [resolvable:$true] %s84_s20 }
  0x61   :  { %s107_s1 = sshll.u32 %s2164_s8, 4  ;;  %s2025_s30 = scalar_lea.vmem %s85_s20, 128  ;;  %s108_s1 = int_to_ptr.vmem [resolvable:$true] %s107_s1 }
  0x62   :  { %p2026_p12 = scmp.ne.s32.totalorder %s85_s20, %s2025_s30  ;;  %p2030_p13 = scmp.lt.s32.totalorder %s85_s20, %s85_s20 }
  0x63   :  { %p2031_p0 = scmp.lt.s32.totalorder %s2025_s30, %s2025_s30 }
  0x65   :  { %65 = dma.hbm_to_vmem [thread:$0]  %s2636_s5, 128, %s63_s25, [#allocation6]  }
  0x66   :  { %p2032_p1 = por %p2031_p0, %p2030_p13 }
  0x68   :  { %p2033_p2 = pnand %p2032_p1, %p2026_p12 }
  0x6a   :  { %2036 = shalt.err (!%p2033_p2)
}
  0x6b   :  { %87 = dma.hbm_to_vmem [thread:$0]  %s2613_s4, 128, %s85_s20, [#allocation9]  }
  0x6c   :  { %s2045_s21 = scalar_lea.vmem %s108_s1, 2048  ;;  %p2050_p4 = scmp.lt.s32.totalorder %s108_s1, %s108_s1 }
  0x6d   :  { %p2046_p3 = scmp.ne.s32.totalorder %s108_s1, %s2045_s21  ;;  %p2051_p5 = scmp.lt.s32.totalorder %s2045_s21, %s2045_s21 }
  0x6f   :  { %p2052_p6 = por %p2051_p5, %p2050_p4 }
  0x71   :  { %p2053_p7 = pnand %p2052_p6, %p2046_p3 }
  0x73   :  { %2056 = shalt.err (!%p2053_p7)
}
  0x74   :  { %113 = dma.hbm_to_vmem [thread:$0]  %s2616_s7, 2048, %s108_s1, [#allocation12], %s2155_s22, %s2155_s22, %s2156_s2  }
  0x75   :  { %s2165_s3 = smov [#allocation16]   ;;  %s2166_s27 = smov [#allocation19]  }
  0x76   :  { %s133_s26 = sshll.u32 %s2165_s3, 4  ;;  %s159_s15 = sshll.u32 %s2166_s27, 4  ;;  %s134_s26 = int_to_ptr.vmem [resolvable:$true] %s133_s26  ;;  %s160_s15 = int_to_ptr.vmem [resolvable:$true] %s159_s15 }
  0x77   :  { %s2065_s4 = scalar_lea.vmem %s134_s26, 2048  ;;  %p2070_p9 = scmp.lt.s32.totalorder %s134_s26, %s134_s26 }
  0x78   :  { %p2066_p8 = scmp.ne.s32.totalorder %s134_s26, %s2065_s4  ;;  %p2071_p10 = scmp.lt.s32.totalorder %s2065_s4, %s2065_s4 }
  0x7a   :  { %p2072_p11 = por %p2071_p10, %p2070_p9 }
  0x7c   :  { %p2073_p12 = pnand %p2072_p11, %p2066_p8 }
  0x7e   :  { %2076 = shalt.err (!%p2073_p12)
}
  0x7f   :  { %139 = dma.hbm_to_vmem [thread:$0]  %s2619_s10, 2048, %s134_s26, [#allocation15], %s2155_s22, %s2155_s22, %s2156_s2  }
  0x80   :  { %s2085_s7 = scalar_lea.vmem %s160_s15, 2048  ;;  %p2090_p0 = scmp.lt.s32.totalorder %s160_s15, %s160_s15 }
  0x81   :  { %p2086_p13 = scmp.ne.s32.totalorder %s160_s15, %s2085_s7  ;;  %p2091_p1 = scmp.lt.s32.totalorder %s2085_s7, %s2085_s7 }
  0x83   :  { %p2092_p2 = por %p2091_p1, %p2090_p0 }
  0x85   :  { %p2093_p3 = pnand %p2092_p2, %p2086_p13 }
  0x87   :  { %2096 = shalt.err (!%p2093_p3)
}
  0x88   :  { %165 = dma.hbm_to_vmem [thread:$0]  %s2622_s13, 2048, %s160_s15, [#allocation18], %s2155_s22, %s2155_s22, %s2156_s2  }
  0x89   :  { %s2167_s20 = smov [#allocation22]  }
  0x8a   :  { %s187_s8 = sshll.u32 %s2167_s20, 4  ;;  %s188_s8 = int_to_ptr.vmem [resolvable:$true] %s187_s8 }
  0x8b   :  { %s2105_s1 = scalar_lea.vmem %s188_s8, 2048  ;;  %p2110_p5 = scmp.lt.s32.totalorder %s188_s8, %s188_s8 }
  0x8c   :  { %p2106_p4 = scmp.ne.s32.totalorder %s188_s8, %s2105_s1  ;;  %p2111_p6 = scmp.lt.s32.totalorder %s2105_s1, %s2105_s1 }
  0x8e   :  { %p2112_p7 = por %p2111_p6, %p2110_p5 }
  0x90   :  { %p2113_p8 = pnand %p2112_p7, %p2106_p4 }
  0x92   :  { %2116 = shalt.err (!%p2113_p8)
}
  0x93   :  { %193 = dma.hbm_to_vmem [thread:$0]  %s2626_s17, 2048, %s188_s8, [#allocation21], %s2155_s22, %s2155_s22, %s2156_s2  }
  0x94   :  { %2137 = dma.done.wait [#allocation3], 384  }
  0x95   :  { %2138 = vsyncadd [#allocation3], 4294966912 }
  0x96   :  { %2139 = dma.done.wait [#allocation6], 512  }
  0x97   :  { %2140 = vsyncadd [#allocation6], 4294966784 }
  0x98   :  { %2141 = dma.done.wait [#allocation9], 512  }
  0x99   :  { %2142 = vsyncadd [#allocation9], 4294966784 }
  0x9a   :  { %2143 = dma.done.wait [#allocation12], 4096  }
  0x9b   :  { %2144 = vsyncadd [#allocation12], 4294963200 }
  0x9c   :  { %2145 = dma.done.wait [#allocation15], 4096  }
  0x9d   :  { %2146 = vsyncadd [#allocation15], 4294963200 }
  0x9e   :  { %2147 = dma.done.wait [#allocation18], 4096  }
  0x9f   :  { %2148 = vsyncadd [#allocation18], 4294963200 }
  0xa0   :  { %2149 = dma.done.wait [#allocation21], 4096  }
  0xa1   :  { %2150 = vsyncadd [#allocation21], 4294963200  ;;  %v2168_v0 = vmov 0.0   ;;  %vm2169_vm0 = vmmov 0   ;;  %v253_v1 = vld [vmem:[#allocation11 + $0x78] sm:$0xff]  ;;  %v252_v2 = vld [vmem:[#allocation11 + $0x70] sm:$0xff] }
  0xa2   :  { %1490 = vmatprep.subr.mxu0 %v2168_v0  ;;  %1522 = vmatprep.mubr.msk.f32.mxu0 %vm2169_vm0, %v2168_v0  ;;  %v251_v3 = vld [vmem:[#allocation11 + $0x68] sm:$0xff]  ;;  %v250_v4 = vld [vmem:[#allocation11 + $0x60] sm:$0xff]  ;;  %v249_v5 = vld [vmem:[#allocation11 + $0x58] sm:$0xff]  ;;  %vm350_vm1 = vcmask 195584   ;;  %s2170_s11 = smov [#allocation23]  }
  0xa3   :  { %1531 = vmatprep.subr.mxu1 %v2168_v0  ;;  %1537 = vmatprep.mubr.msk.f32.mxu1 %vm2169_vm0, %v2168_v0  ;;  %v248_v6 = vld [vmem:[#allocation11 + $0x50] sm:$0xff]  ;;  %v247_v7 = vld [vmem:[#allocation11 + $0x48] sm:$0xff]  ;;  %v246_v8 = vld [vmem:[#allocation11 + $0x40] sm:$0xff]  ;;  %s1300_s3 = sshll.u32 %s2170_s11, 4  ;;  %s1301_s3 = int_to_ptr.vmem [resolvable:$true] %s1300_s3 }
  0xa4   :  { %1491 = vmatpush3.msra.mxu0 %v253_v1  ;;  %v245_v9 = vld [vmem:[#allocation11 + $0x38] sm:$0xff]  ;;  %v244_v10 = vld [vmem:[#allocation11 + $0x30] sm:$0xff]  ;;  %v243_v11 = vld [vmem:[#allocation11 + $0x28] sm:$0xff]  ;;  %s2117_s26 = scalar_lea.vmem %s1301_s3, 128  ;;  %p2122_p10 = scmp.lt.s32.totalorder %s1301_s3, %s1301_s3 }
  0xa5   :  { %1492 = vmatprep.subr.mxu0 %v2168_v0  ;;  %v242_v12 = vld [vmem:[#allocation11 + $0x20] sm:$0xff]  ;;  %v241_v13 = vld [vmem:[#allocation11 + $0x18] sm:$0xff]  ;;  %v240_v14 = vld [vmem:[#allocation11 + $0x10] sm:$0xff]  ;;  %p2118_p9 = scmp.ne.s32.totalorder %s1301_s3, %s2117_s26  ;;  %p2123_p11 = scmp.lt.s32.totalorder %s2117_s26, %s2117_s26 }
  0xa6   :  { %1493 = vmatpush3.msra.mxu0 %v252_v2  ;;  %v239_v15 = vld [vmem:[#allocation11 + $0x8] sm:$0xff]  ;;  %v238_v16 = vld [vmem:[#allocation11] sm:$0xff]  ;;  %v455_v18 = vld [vmem:[#allocation13 + $0x78] sm:$0xff] }
  0xa7   :  { %1494 = vmatprep.subr.mxu0 %v2168_v0  ;;  %v235_v17 = vld [vmem:[#allocation2] sm:$0xff]  ;;  %v454_v19 = vld [vmem:[#allocation13 + $0x70] sm:$0xff]  ;;  %v452_v22 = vld [vmem:[#allocation13 + $0x60] sm:$0xff]  ;;  %p2124_p12 = por %p2123_p11, %p2122_p10 }
  0xa8   :  { %1495 = vmatpush3.msra.mxu0 %v251_v3  ;;  %v236_v20 = vld [vmem:[#allocation2 + $0x8] sm:$0xff]  ;;  %v453_v21 = vld [vmem:[#allocation13 + $0x68] sm:$0xff]  ;;  %v237_v23 = vld [vmem:[#allocation2 + $0x10] sm:$0xff] }
  0xa9   :  { %1496 = vmatprep.subr.mxu0 %v2168_v0  ;;  %v451_v24 = vld [vmem:[#allocation13 + $0x58] sm:$0xff]  ;;  %v450_v25 = vld [vmem:[#allocation13 + $0x50] sm:$0xff]  ;;  %v449_v26 = vld [vmem:[#allocation13 + $0x48] sm:$0xff]  ;;  %p2125_p13 = pnand %p2124_p12, %p2118_p9 }
  0xaa   :  { %1497 = vmatpush3.msra.mxu0 %v250_v4  ;;  %v448_v27 = vld [vmem:[#allocation13 + $0x40] sm:$0xff]  ;;  %v447_v28 = vld [vmem:[#allocation13 + $0x38] sm:$0xff]  ;;  %v446_v29 = vld [vmem:[#allocation13 + $0x30] sm:$0xff] }
  0xab   :  { %1498 = vmatprep.subr.mxu0 %v2168_v0  ;;  %v445_v30 = vld [vmem:[#allocation13 + $0x28] sm:$0xff]  ;;  %v444_v31 = vld [vmem:[#allocation13 + $0x20] sm:$0xff]  ;;  %v443_v32 = vld [vmem:[#allocation13 + $0x18] sm:$0xff] }
  0xac   :  { %1499 = vmatpush3.msra.mxu0 %v249_v5  ;;  %v442_v33 = vld [vmem:[#allocation13 + $0x10] sm:$0xff]  ;;  %v441_v34 = vld [vmem:[#allocation13 + $0x8] sm:$0xff]  ;;  %v440_v35 = vld [vmem:[#allocation13] sm:$0xff] }
  0xad   :  { %1500 = vmatprep.subr.mxu0 %v2168_v0  ;;  %v1315_v36 = vld [vmem:[%s2615_s6] ss:$0 sm:$0xff]  ;;  %v341_v38 = vld [vmem:[#allocation8] sm:$0xff]  ;;  %v343_v48 = vld [vmem:[#allocation8 + $0x10] sm:$0xff] }
  0xae   :  { %1501 = vmatpush3.msra.mxu0 %v248_v6  ;;  %v342_v43 = vld [vmem:[#allocation8 + $0x8] sm:$0xff]  ;;  %v2408_v52 = vld [vmem:[#allocation5] sm:$0xff]  ;;  %v471_v53 = vld [vmem:[#allocation14 + $0x78] sm:$0xff] }
  0xaf   :  { %1502 = vmatprep.subr.mxu0 %v2168_v0  ;;  %v470_v54 = vld [vmem:[#allocation14 + $0x70] sm:$0xff]  ;;  %v2417_v55 = vld [vmem:[#allocation5 + $0x8] sm:$0xff]  ;;  %v468_v57 = vld [vmem:[#allocation14 + $0x60] sm:$0xff] }
  0xb0   :  { %1503 = vmatpush3.msra.mxu0 %v247_v7  ;;  %v469_v56 = vld [vmem:[#allocation14 + $0x68] sm:$0xff]  ;;  %v2425_v58 = vld [vmem:[#allocation5 + $0x10] sm:$0xff]  ;;  %v467_v59 = vld [vmem:[#allocation14 + $0x58] sm:$0xff] }
  0xb1   :  { %1504 = vmatprep.subr.mxu0 %v2168_v0  ;;  %v466_v60 = vld [vmem:[#allocation14 + $0x50] sm:$0xff]  ;;  %v465_v61 = vld [vmem:[#allocation14 + $0x48] sm:$0xff]  ;;  %v464_v62 = vld [vmem:[#allocation14 + $0x40] sm:$0xff] }
  0xb2   :  { %1505 = vmatpush3.msra.mxu0 %v246_v8  ;;  %v463_v63 = vld [vmem:[#allocation14 + $0x38] sm:$0xff]  ;;  %v462_v1 = vld [vmem:[#allocation14 + $0x30] sm:$0xff]  ;;  %v461_v2 = vld [vmem:[#allocation14 + $0x28] sm:$0xff] }
  0xb3   :  { %1506 = vmatprep.subr.mxu0 %v2168_v0  ;;  %v460_v3 = vld [vmem:[#allocation14 + $0x20] sm:$0xff]  ;;  %v459_v4 = vld [vmem:[#allocation14 + $0x18] sm:$0xff]  ;;  %v458_v5 = vld [vmem:[#allocation14 + $0x10] sm:$0xff] }
  0xb4   :  { %1507 = vmatpush3.msra.mxu0 %v245_v9  ;;  %v457_v6 = vld [vmem:[#allocation14 + $0x8] sm:$0xff]  ;;  %v456_v7 = vld [vmem:[#allocation14] sm:$0xff] }
  0xb5   :  { %1508 = vmatprep.subr.mxu0 %v2168_v0 }
  0xb6   :  { %1509 = vmatpush3.msra.mxu0 %v244_v10 }
  0xb7   :  { %1510 = vmatprep.subr.mxu0 %v2168_v0 }
  0xb8   :  { %1511 = vmatpush3.msra.mxu0 %v243_v11 }
  0xb9   :  { %1512 = vmatprep.subr.mxu0 %v2168_v0 }
  0xba   :  { %1513 = vmatpush3.msra.mxu0 %v242_v12 }
  0xbb   :  { %1514 = vmatprep.subr.mxu0 %v2168_v0 }
  0xbc   :  { %1515 = vmatpush3.msra.mxu0 %v241_v13 }
  0xbd   :  { %1516 = vmatprep.subr.mxu0 %v2168_v0 }
  0xbe   :  { %1517 = vmatpush3.msra.mxu0 %v240_v14 }
  0xbf   :  { %1518 = vmatprep.subr.mxu0 %v2168_v0 }
  0xc0   :  { %1519 = vmatpush3.msra.mxu0 %v239_v15 }
  0xc1   :  { %1520 = vmatprep.subr.mxu0 %v2168_v0 }
  0xc2   :  { %1521 = vmatpush3.msra.mxu0 %v238_v16 }
  0xc3   :  { %1523 = vmatmul.mubr.f32.vlgmr.msra.gmra.mxu0 %v235_v17  ;;  %1587 = vmatprep.subr.mxu0 %v2168_v0 }
  0xc4   :  { %1525 = vmatprep.mubr.msk.f32.mxu0 %vm2169_vm0, %v2168_v0  ;;  %1588 = vmatpush3.msra.mxu0 %v455_v18 }
  0xc5   :  { %1589 = vmatprep.subr.mxu0 %v2168_v0 }
  0xc6   :  { %1590 = vmatpush3.msra.mxu0 %v454_v19 }
  0xc7   :  { %1526 = vmatmul.mubr.f32.gmra.mxu0 %v236_v20  ;;  %1591 = vmatprep.subr.mxu0 %v2168_v0  ;;  %v759_v20 = vld [vmem:[#allocation17 + $0x78] sm:$0xff] }
  0xc8   :  { %1528 = vmatprep.mubr.msk.f32.mxu0 %vm2169_vm0, %v2168_v0  ;;  %1592 = vmatpush3.msra.mxu0 %v453_v21  ;;  %v758_v21 = vld [vmem:[#allocation17 + $0x70] sm:$0xff] }
  0xc9   :  { %1593 = vmatprep.subr.mxu0 %v2168_v0 }
  0xca   :  { %1594 = vmatpush3.msra.mxu0 %v452_v22  ;;  %v757_v22 = vld [vmem:[#allocation17 + $0x68] sm:$0xff] }
  0xcb   :  { %1529 = vmatmul.mubr.f32.gmra.mxu0 %v237_v23  ;;  %1595 = vmatprep.subr.mxu0 %v2168_v0  ;;  %v756_v23 = vld [vmem:[#allocation17 + $0x60] sm:$0xff] }
  0xcc   :  { %1596 = vmatpush3.msra.mxu0 %v451_v24  ;;  %1619 = vmatprep.mubr.msk.f32.mxu0 %vm2169_vm0, %v2168_v0  ;;  %v755_v24 = vld [vmem:[#allocation17 + $0x58] sm:$0xff] }
  0xcd   :  { %1597 = vmatprep.subr.mxu0 %v2168_v0 }
  0xce   :  { %1598 = vmatpush3.msra.mxu0 %v450_v25  ;;  %v754_v25 = vld [vmem:[#allocation17 + $0x50] sm:$0xff] }
  0xcf   :  { %1599 = vmatprep.subr.mxu0 %v2168_v0 }
  0xd0   :  { %1600 = vmatpush3.msra.mxu0 %v449_v26  ;;  %v753_v26 = vld [vmem:[#allocation17 + $0x48] sm:$0xff] }
  0xd1   :  { %1601 = vmatprep.subr.mxu0 %v2168_v0 }
  0xd2   :  { %1602 = vmatpush3.msra.mxu0 %v448_v27  ;;  %v752_v27 = vld [vmem:[#allocation17 + $0x40] sm:$0xff] }
  0xd3   :  { %1603 = vmatprep.subr.mxu0 %v2168_v0 }
  0xd4   :  { %1604 = vmatpush3.msra.mxu0 %v447_v28  ;;  %v751_v28 = vld [vmem:[#allocation17 + $0x38] sm:$0xff] }
  0xd5   :  { %1605 = vmatprep.subr.mxu0 %v2168_v0 }
  0xd6   :  { %1606 = vmatpush3.msra.mxu0 %v446_v29  ;;  %v750_v29 = vld [vmem:[#allocation17 + $0x30] sm:$0xff] }
  0xd7   :  { %1607 = vmatprep.subr.mxu0 %v2168_v0 }
  0xd8   :  { %1608 = vmatpush3.msra.mxu0 %v445_v30  ;;  %v749_v30 = vld [vmem:[#allocation17 + $0x28] sm:$0xff] }
  0xd9   :  { %1609 = vmatprep.subr.mxu0 %v2168_v0 }
  0xda   :  { %1610 = vmatpush3.msra.mxu0 %v444_v31  ;;  %v748_v31 = vld [vmem:[#allocation17 + $0x20] sm:$0xff] }
  0xdb   :  { %1611 = vmatprep.subr.mxu0 %v2168_v0 }
  0xdc   :  { %1612 = vmatpush3.msra.mxu0 %v443_v32  ;;  %v747_v32 = vld [vmem:[#allocation17 + $0x18] sm:$0xff] }
  0xdd   :  { %1613 = vmatprep.subr.mxu0 %v2168_v0 }
  0xde   :  { %1614 = vmatpush3.msra.mxu0 %v442_v33  ;;  %v746_v33 = vld [vmem:[#allocation17 + $0x10] sm:$0xff] }
  0xdf   :  { %1615 = vmatprep.subr.mxu0 %v2168_v0 }
  0xe0   :  { %1616 = vmatpush3.msra.mxu0 %v441_v34  ;;  %v745_v34 = vld [vmem:[#allocation17 + $0x8] sm:$0xff] }
  0xe1   :  { %1617 = vmatprep.subr.mxu0 %v2168_v0 }
  0xe2   :  { %1618 = vmatpush3.msra.mxu0 %v440_v35 }
  0xe3   :  { %1628 = vmatprep.subr.mxu0 %v2168_v0 }
 0x183   :  { %v327_v37 = vpop.f32.mrf.mxu0 }
 0x184   :  { %v328_v39 = vadd.f32 %v1315_v36, %v327_v37 }
 0x185   :  { %v1524_v40 = vpop.f32.mrf.mxu0 }
 0x186   :  { %v2390_v41 = vmul.f32 %v341_v38, %v328_v39 }
 0x187   :  { %v332_v42 = vpop.f32.mrf.mxu0 }
 0x188   :  { %v333_v44 = vadd.f32 %v1315_v36, %v332_v42  ;;  %1620 = vmatmul.mubr.f32.vlgmr.msra.gmra.mxu0 %v2390_v41  ;;  %v1319_v42 = vld [vmem:[%s2618_s9] ss:$0 sm:$0xff] }
 0x189   :  { %v1527_v45 = vpop.f32.mrf.mxu0  ;;  %1622 = vmatprep.mubr.msk.f32.mxu0 %vm2169_vm0, %v2168_v0 }
 0x18a   :  { %v2395_v46 = vmul.f32 %v342_v43, %v333_v44 }
 0x18b   :  { %v337_v47 = vpop.f32.mrf.mxu0 }
 0x18c   :  { %v338_v49 = vadd.f32 %v1315_v36, %v337_v47  ;;  %1623 = vmatmul.mubr.f32.gmra.mxu0 %v2395_v46 }
 0x18d   :  { %v1530_v50 = vpop.f32.mrf.mxu0  ;;  %1625 = vmatprep.mubr.msk.f32.mxu0 %vm2169_vm0, %v2168_v0 }
 0x18e   :  { %v2400_v51 = vmul.f32 %v343_v48, %v338_v49 }
 0x190   :  { %1532 = vmatpush3.msra.mxu1 %v2400_v51  ;;  %1626 = vmatmul.mubr.f32.gmra.mxu0 %v2400_v51 }
 0x191   :  { %1533 = vmatprep.subr.mxu1 %v2168_v0  ;;  %1634 = vmatprep.mubr.msk.f32.mxu0 %vm2169_vm0, %v2168_v0 }
 0x192   :  { %1534 = vmatpush3.msra.mxu1 %v2395_v46 }
 0x193   :  { %1535 = vmatprep.subr.mxu1 %v2168_v0 }
 0x194   :  { %1536 = vmatpush3.msra.mxu1 %v2390_v41 }
 0x195   :  { %1538 = vmatmul.mubr.msk.f32.vlgmr.msra.gmra.mxu1 %vm350_vm1, %v2408_v52  ;;  %1546 = vmatprep.subr.mxu1 %v2168_v0 }
 0x196   :  { %1540 = vmatprep.mubr.msk.f32.mxu1 %vm2169_vm0, %v2168_v0  ;;  %1547 = vmatpush3.msra.mxu1 %v471_v53 }
 0x197   :  { %1548 = vmatprep.subr.mxu1 %v2168_v0 }
 0x198   :  { %1549 = vmatpush3.msra.mxu1 %v470_v54 }
 0x199   :  { %1541 = vmatmul.mubr.msk.f32.gmra.mxu1 %vm350_vm1, %v2417_v55  ;;  %1550 = vmatprep.subr.mxu1 %v2168_v0 }
 0x19a   :  { %1543 = vmatprep.mubr.msk.f32.mxu1 %vm2169_vm0, %v2168_v0  ;;  %1551 = vmatpush3.msra.mxu1 %v469_v56 }
 0x19b   :  { %1552 = vmatprep.subr.mxu1 %v2168_v0 }
 0x19c   :  { %1553 = vmatpush3.msra.mxu1 %v468_v57 }
 0x19d   :  { %1544 = vmatmul.mubr.msk.f32.gmra.mxu1 %vm350_vm1, %v2425_v58  ;;  %1554 = vmatprep.subr.mxu1 %v2168_v0 }
 0x19e   :  { %1555 = vmatpush3.msra.mxu1 %v467_v59  ;;  %1578 = vmatprep.mubr.msk.f32.mxu1 %vm2169_vm0, %v2168_v0 }
 0x19f   :  { %1556 = vmatprep.subr.mxu1 %v2168_v0 }
 0x1a0   :  { %1557 = vmatpush3.msra.mxu1 %v466_v60  ;;  %v743_v60 = vld [vmem:[#allocation16 + $0x78] sm:$0xff] }
 0x1a1   :  { %1558 = vmatprep.subr.mxu1 %v2168_v0 }
 0x1a2   :  { %1559 = vmatpush3.msra.mxu1 %v465_v61  ;;  %v738_v61 = vld [vmem:[#allocation16 + $0x50] sm:$0xff] }
 0x1a3   :  { %1560 = vmatprep.subr.mxu1 %v2168_v0 }
 0x1a4   :  { %1561 = vmatpush3.msra.mxu1 %v464_v62  ;;  %v736_v62 = vld [vmem:[#allocation16 + $0x40] sm:$0xff] }
 0x1a5   :  { %1562 = vmatprep.subr.mxu1 %v2168_v0 }
 0x1a6   :  { %1563 = vmatpush3.msra.mxu1 %v463_v63  ;;  %v735_v63 = vld [vmem:[#allocation16 + $0x38] sm:$0xff] }
 0x1a7   :  { %1564 = vmatprep.subr.mxu1 %v2168_v0 }
 0x1a8   :  { %1565 = vmatpush3.msra.mxu1 %v462_v1  ;;  %v733_v1 = vld [vmem:[#allocation16 + $0x28] sm:$0xff] }
 0x1a9   :  { %1566 = vmatprep.subr.mxu1 %v2168_v0 }
 0x1aa   :  { %1567 = vmatpush3.msra.mxu1 %v461_v2  ;;  %v732_v2 = vld [vmem:[#allocation16 + $0x20] sm:$0xff] }
 0x1ab   :  { %1568 = vmatprep.subr.mxu1 %v2168_v0 }
 0x1ac   :  { %1569 = vmatpush3.msra.mxu1 %v460_v3  ;;  %v731_v3 = vld [vmem:[#allocation16 + $0x18] sm:$0xff] }
 0x1ad   :  { %1570 = vmatprep.subr.mxu1 %v2168_v0 }
 0x1ae   :  { %1571 = vmatpush3.msra.mxu1 %v459_v4  ;;  %v730_v4 = vld [vmem:[#allocation16 + $0x10] sm:$0xff] }
 0x1af   :  { %1572 = vmatprep.subr.mxu1 %v2168_v0 }
 0x1b0   :  { %1573 = vmatpush3.msra.mxu1 %v458_v5  ;;  %v729_v5 = vld [vmem:[#allocation16 + $0x8] sm:$0xff] }
 0x1b1   :  { %1574 = vmatprep.subr.mxu1 %v2168_v0 }
 0x1b2   :  { %1575 = vmatpush3.msra.mxu1 %v457_v6  ;;  %v728_v6 = vld [vmem:[#allocation16] sm:$0xff] }
 0x1b3   :  { %1576 = vmatprep.subr.mxu1 %v2168_v0 }
 0x1b4   :  { %1577 = vmatpush3.msra.mxu1 %v456_v7  ;;  %v744_v7 = vld [vmem:[#allocation17] sm:$0xff] }
 0x1b5   :  { %1643 = vmatprep.subr.mxu1 %v2168_v0 }
 0x248   :  { %v2445_v8 = vpop.f32.mrf.mxu0 }
 0x24a   :  { %v1621_v9 = vpop.f32.mrf.mxu0 }
 0x24c   :  { %v2447_v10 = vpop.f32.mrf.mxu0 }
 0x24e   :  { %v1624_v11 = vpop.f32.mrf.mxu0 }
 0x250   :  { %v2449_v12 = vpop.f32.mrf.mxu0 }
 0x252   :  { %v1627_v13 = vpop.f32.mrf.mxu0 }
 0x255   :  { %v426_v14 = vpop.f32.mrf.mxu1 }
 0x256   :  { %1579 = vmatmul.mubr.f32.vlgmr.msra.gmra.mxu1 %v426_v14 }
 0x257   :  { %v1539_v15 = vpop.f32.mrf.mxu1  ;;  %1581 = vmatprep.mubr.msk.f32.mxu1 %vm2169_vm0, %v2168_v0  ;;  %1644 = vmatpush3.msra.mxu1 %v759_v20 }
 0x258   :  { %1645 = vmatprep.subr.mxu1 %v2168_v0 }
 0x259   :  { %v431_v16 = vpop.f32.mrf.mxu1  ;;  %1646 = vmatpush3.msra.mxu1 %v758_v21 }
 0x25a   :  { %1582 = vmatmul.mubr.f32.gmra.mxu1 %v431_v16  ;;  %1647 = vmatprep.subr.mxu1 %v2168_v0 }
 0x25b   :  { %v1542_v17 = vpop.f32.mrf.mxu1  ;;  %1584 = vmatprep.mubr.msk.f32.mxu1 %vm2169_vm0, %v2168_v0  ;;  %1648 = vmatpush3.msra.mxu1 %v757_v22 }
 0x25c   :  { %1649 = vmatprep.subr.mxu1 %v2168_v0 }
 0x25d   :  { %v436_v18 = vpop.f32.mrf.mxu1  ;;  %1650 = vmatpush3.msra.mxu1 %v756_v23 }
 0x25e   :  { %1585 = vmatmul.mubr.f32.gmra.mxu1 %v436_v18  ;;  %1651 = vmatprep.subr.mxu1 %v2168_v0 }
 0x25f   :  { %v1545_v19 = vpop.f32.mrf.mxu1  ;;  %1675 = vmatprep.mubr.msk.f32.mxu1 %vm2169_vm0, %v2168_v0  ;;  %1652 = vmatpush3.msra.mxu1 %v755_v24 }
 0x260   :  { %1653 = vmatprep.subr.mxu1 %v2168_v0 }
 0x261   :  { %1654 = vmatpush3.msra.mxu1 %v754_v25 }
 0x262   :  { %1655 = vmatprep.subr.mxu1 %v2168_v0 }
 0x263   :  { %1656 = vmatpush3.msra.mxu1 %v753_v26  ;;  %v1323_v26 = vld [vmem:[%s2621_s12] ss:$0 sm:$0xff] }
 0x264   :  { %1657 = vmatprep.subr.mxu1 %v2168_v0 }
 0x265   :  { %1658 = vmatpush3.msra.mxu1 %v752_v27 }
 0x266   :  { %1659 = vmatprep.subr.mxu1 %v2168_v0 }
 0x267   :  { %1660 = vmatpush3.msra.mxu1 %v751_v28 }
 0x268   :  { %1661 = vmatprep.subr.mxu1 %v2168_v0 }
 0x269   :  { %1662 = vmatpush3.msra.mxu1 %v750_v29 }
 0x26a   :  { %1663 = vmatprep.subr.mxu1 %v2168_v0 }
 0x26b   :  { %1664 = vmatpush3.msra.mxu1 %v749_v30 }
 0x26c   :  { %1665 = vmatprep.subr.mxu1 %v2168_v0 }
 0x26d   :  { %1666 = vmatpush3.msra.mxu1 %v748_v31 }
 0x26e   :  { %1667 = vmatprep.subr.mxu1 %v2168_v0 }
 0x26f   :  { %1668 = vmatpush3.msra.mxu1 %v747_v32 }
 0x270   :  { %1669 = vmatprep.subr.mxu1 %v2168_v0 }
 0x271   :  { %1670 = vmatpush3.msra.mxu1 %v746_v33 }
 0x272   :  { %1671 = vmatprep.subr.mxu1 %v2168_v0 }
 0x273   :  { %1672 = vmatpush3.msra.mxu1 %v745_v34 }
 0x274   :  { %1673 = vmatprep.subr.mxu1 %v2168_v0 }
 0x275   :  { %1674 = vmatpush3.msra.mxu1 %v744_v7 }
 0x276   :  { %1725 = vmatprep.subr.mxu1 %v2168_v0 }
 0x316   :  { %v538_v35 = vpop.f32.mrf.mxu1 }
 0x317   :  { %v619_v40 = vadd.f32 %v2445_v8, %v538_v35 }
 0x318   :  { %v1580_v36 = vpop.f32.mrf.mxu1 }
 0x319   :  { %v639_v48 = vadd.f32 %v1319_v42, %v619_v40  ;;  %v1027_v40 = vld [vmem:[#allocation19 + $0x78] sm:$0xff] }
 0x31a   :  { %v543_v37 = vpop.f32.mrf.mxu1 }
 0x31b   :  { %v624_v38 = vadd.f32 %v2447_v10, %v543_v37  ;;  %v642_v54 = vmax.f32 %v639_v48, 0.0  ;;  %v1021_v48 = vld [vmem:[#allocation19 + $0x48] sm:$0xff] }
 0x31c   :  { %v1583_v39 = vpop.f32.mrf.mxu1 }
 0x31d   :  { %v640_v44 = vadd.f32 %v1319_v42, %v624_v38  ;;  %v2487_v59 = vadd.f32 %v642_v54, %v2390_v41  ;;  %v741_v41 = vld [vmem:[#allocation16 + $0x68] sm:$0xff]  ;;  %v936_v39 = vld [vmem:[#allocation7] sm:$0xff] }
 0x31e   :  { %v548_v43 = vpop.f32.mrf.mxu1  ;;  %v1017_v54 = vld [vmem:[#allocation19 + $0x28] sm:$0xff] }
 0x31f   :  { %v629_v45 = vadd.f32 %v2449_v12, %v548_v43  ;;  %v643_v50 = vmax.f32 %v640_v44, 0.0  ;;  %v1025_v43 = vld [vmem:[#allocation19 + $0x68] sm:$0xff]  ;;  %v1024_v44 = vld [vmem:[#allocation19 + $0x60] sm:$0xff] }
 0x320   :  { %v1586_v47 = vpop.f32.mrf.mxu1 }
 0x321   :  { %v641_v49 = vadd.f32 %v1319_v42, %v629_v45  ;;  %v2482_v57 = vadd.f32 %v643_v50, %v2395_v46  ;;  %v742_v46 = vld [vmem:[#allocation16 + $0x70] sm:$0xff]  ;;  %v1023_v45 = vld [vmem:[#allocation19 + $0x58] sm:$0xff] }
 0x322   :  { %v1026_v42 = vld [vmem:[#allocation19 + $0x70] sm:$0xff]  ;;  %v1019_v50 = vld [vmem:[#allocation19 + $0x38] sm:$0xff] }
 0x323   :  { %v644_v53 = vmax.f32 %v641_v49, 0.0  ;;  %v1022_v47 = vld [vmem:[#allocation19 + $0x50] sm:$0xff]  ;;  %v1020_v49 = vld [vmem:[#allocation19 + $0x40] sm:$0xff] }
 0x325   :  { %v2479_v56 = vadd.f32 %v644_v53, %v2400_v51  ;;  %v740_v51 = vld [vmem:[#allocation16 + $0x60] sm:$0xff]  ;;  %v1018_v53 = vld [vmem:[#allocation19 + $0x30] sm:$0xff] }
 0x327   :  { %1629 = vmatpush3.msra.mxu0 %v2479_v56 }
 0x328   :  { %1630 = vmatprep.subr.mxu0 %v2168_v0 }
 0x329   :  { %1631 = vmatpush3.msra.mxu0 %v2482_v57 }
 0x32a   :  { %1632 = vmatprep.subr.mxu0 %v2168_v0 }
 0x32b   :  { %1633 = vmatpush3.msra.mxu0 %v2487_v59 }
 0x32c   :  { %1635 = vmatmul.mubr.msk.f32.vlgmr.msra.gmra.mxu0 %vm350_vm1, %v2408_v52  ;;  %1684 = vmatprep.subr.mxu0 %v2168_v0  ;;  %v739_v52 = vld [vmem:[#allocation16 + $0x58] sm:$0xff] }
 0x32d   :  { %1685 = vmatpush3.msra.mxu0 %v743_v60  ;;  %1637 = vmatprep.mubr.msk.f32.mxu0 %vm2169_vm0, %v2168_v0  ;;  %v1013_v60 = vld [vmem:[#allocation19 + $0x8] sm:$0xff] }
 0x32e   :  { %1686 = vmatprep.subr.mxu0 %v2168_v0 }
 0x32f   :  { %1687 = vmatpush3.msra.mxu0 %v742_v46  ;;  %v1012_v46 = vld [vmem:[#allocation19] sm:$0xff] }
 0x330   :  { %1638 = vmatmul.mubr.msk.f32.gmra.mxu0 %vm350_vm1, %v2417_v55  ;;  %1688 = vmatprep.subr.mxu0 %v2168_v0  ;;  %v737_v55 = vld [vmem:[#allocation16 + $0x48] sm:$0xff] }
 0x331   :  { %1689 = vmatpush3.msra.mxu0 %v741_v41  ;;  %1640 = vmatprep.mubr.msk.f32.mxu0 %vm2169_vm0, %v2168_v0  ;;  %v1121_v41 = vld [vmem:[#allocation20 + $0x78] sm:$0xff] }
 0x332   :  { %1690 = vmatprep.subr.mxu0 %v2168_v0 }
 0x333   :  { %1691 = vmatpush3.msra.mxu0 %v740_v51  ;;  %v1120_v51 = vld [vmem:[#allocation20 + $0x70] sm:$0xff] }
 0x334   :  { %1641 = vmatmul.mubr.msk.f32.gmra.mxu0 %vm350_vm1, %v2425_v58  ;;  %1692 = vmatprep.subr.mxu0 %v2168_v0  ;;  %v734_v58 = vld [vmem:[#allocation16 + $0x30] sm:$0xff] }
 0x335   :  { %1693 = vmatpush3.msra.mxu0 %v739_v52  ;;  %1716 = vmatprep.mubr.msk.f32.mxu0 %vm2169_vm0, %v2168_v0  ;;  %v1119_v52 = vld [vmem:[#allocation20 + $0x68] sm:$0xff] }
 0x336   :  { %1694 = vmatprep.subr.mxu0 %v2168_v0 }
 0x337   :  { %1695 = vmatpush3.msra.mxu0 %v738_v61  ;;  %v1118_v61 = vld [vmem:[#allocation20 + $0x60] sm:$0xff] }
 0x338   :  { %1696 = vmatprep.subr.mxu0 %v2168_v0 }
 0x339   :  { %1697 = vmatpush3.msra.mxu0 %v737_v55  ;;  %v1117_v55 = vld [vmem:[#allocation20 + $0x58] sm:$0xff] }
 0x33a   :  { %1698 = vmatprep.subr.mxu0 %v2168_v0 }
 0x33b   :  { %1699 = vmatpush3.msra.mxu0 %v736_v62  ;;  %v1116_v62 = vld [vmem:[#allocation20 + $0x50] sm:$0xff] }
 0x33c   :  { %1700 = vmatprep.subr.mxu0 %v2168_v0 }
 0x33d   :  { %1701 = vmatpush3.msra.mxu0 %v735_v63  ;;  %v1115_v63 = vld [vmem:[#allocation20 + $0x48] sm:$0xff] }
 0x33e   :  { %1702 = vmatprep.subr.mxu0 %v2168_v0 }
 0x33f   :  { %1703 = vmatpush3.msra.mxu0 %v734_v58  ;;  %v1114_v58 = vld [vmem:[#allocation20 + $0x40] sm:$0xff] }
 0x340   :  { %1704 = vmatprep.subr.mxu0 %v2168_v0 }
 0x341   :  { %1705 = vmatpush3.msra.mxu0 %v733_v1  ;;  %v1113_v1 = vld [vmem:[#allocation20 + $0x38] sm:$0xff] }
 0x342   :  { %1706 = vmatprep.subr.mxu0 %v2168_v0 }
 0x343   :  { %1707 = vmatpush3.msra.mxu0 %v732_v2  ;;  %v1112_v2 = vld [vmem:[#allocation20 + $0x30] sm:$0xff] }
 0x344   :  { %1708 = vmatprep.subr.mxu0 %v2168_v0 }
 0x345   :  { %1709 = vmatpush3.msra.mxu0 %v731_v3  ;;  %v1111_v3 = vld [vmem:[#allocation20 + $0x28] sm:$0xff] }
 0x346   :  { %1710 = vmatprep.subr.mxu0 %v2168_v0 }
 0x347   :  { %1711 = vmatpush3.msra.mxu0 %v730_v4  ;;  %v1110_v4 = vld [vmem:[#allocation20 + $0x20] sm:$0xff] }
 0x348   :  { %1712 = vmatprep.subr.mxu0 %v2168_v0 }
 0x349   :  { %1713 = vmatpush3.msra.mxu0 %v729_v5  ;;  %v1109_v5 = vld [vmem:[#allocation20 + $0x18] sm:$0xff] }
 0x34a   :  { %1714 = vmatprep.subr.mxu0 %v2168_v0 }
 0x34b   :  { %1715 = vmatpush3.msra.mxu0 %v728_v6  ;;  %v1010_v6 = vld [vmem:[#allocation10] sm:$0xff] }
 0x34c   :  { %1717 = vmatmul.mubr.f32.vlgmr.msra.gmra.mxu0 %v2487_v59  ;;  %1769 = vmatprep.subr.mxu0 %v2168_v0 }
 0x34d   :  { %1719 = vmatprep.mubr.msk.f32.mxu0 %vm2169_vm0, %v2168_v0  ;;  %1770 = vmatpush3.msra.mxu0 %v1121_v41 }
 0x34e   :  { %1771 = vmatprep.subr.mxu0 %v2168_v0 }
 0x34f   :  { %1772 = vmatpush3.msra.mxu0 %v1120_v51 }
 0x350   :  { %1720 = vmatmul.mubr.f32.gmra.mxu0 %v2482_v57  ;;  %1773 = vmatprep.subr.mxu0 %v2168_v0 }
 0x351   :  { %1722 = vmatprep.mubr.msk.f32.mxu0 %vm2169_vm0, %v2168_v0  ;;  %1774 = vmatpush3.msra.mxu0 %v1119_v52 }
 0x352   :  { %1775 = vmatprep.subr.mxu0 %v2168_v0 }
 0x353   :  { %1776 = vmatpush3.msra.mxu0 %v1118_v61 }
 0x354   :  { %1723 = vmatmul.mubr.f32.gmra.mxu0 %v2479_v56  ;;  %1777 = vmatprep.subr.mxu0 %v2168_v0 }
 0x355   :  { %1801 = vmatprep.mubr.msk.f32.mxu0 %vm2169_vm0, %v2168_v0  ;;  %1778 = vmatpush3.msra.mxu0 %v1117_v55 }
 0x356   :  { %1779 = vmatprep.subr.mxu0 %v2168_v0 }
 0x357   :  { %1780 = vmatpush3.msra.mxu0 %v1116_v62 }
 0x358   :  { %1781 = vmatprep.subr.mxu0 %v2168_v0 }
 0x359   :  { %1782 = vmatpush3.msra.mxu0 %v1115_v63 }
 0x35a   :  { %1783 = vmatprep.subr.mxu0 %v2168_v0 }
 0x35b   :  { %1784 = vmatpush3.msra.mxu0 %v1114_v58 }
 0x35c   :  { %1785 = vmatprep.subr.mxu0 %v2168_v0 }
 0x35d   :  { %1786 = vmatpush3.msra.mxu0 %v1113_v1 }
 0x35e   :  { %1787 = vmatprep.subr.mxu0 %v2168_v0 }
 0x35f   :  { %1788 = vmatpush3.msra.mxu0 %v1112_v2 }
 0x360   :  { %1789 = vmatprep.subr.mxu0 %v2168_v0 }
 0x361   :  { %1790 = vmatpush3.msra.mxu0 %v1111_v3 }
 0x362   :  { %1791 = vmatprep.subr.mxu0 %v2168_v0 }
 0x363   :  { %1792 = vmatpush3.msra.mxu0 %v1110_v4 }
 0x364   :  { %1793 = vmatprep.subr.mxu0 %v2168_v0 }
 0x365   :  { %1794 = vmatpush3.msra.mxu0 %v1109_v5 }
 0x366   :  { %1795 = vmatprep.subr.mxu0 %v2168_v0 }
 0x3ec   :  { %v714_v8 = vpop.f32.mrf.mxu0 }
 0x3ed   :  { %1676 = vmatmul.mubr.f32.vlgmr.msra.gmra.mxu1 %v714_v8 }
 0x3ee   :  { %v1636_v9 = vpop.f32.mrf.mxu0  ;;  %1678 = vmatprep.mubr.msk.f32.mxu1 %vm2169_vm0, %v2168_v0 }
 0x3f0   :  { %v719_v10 = vpop.f32.mrf.mxu0 }
 0x3f1   :  { %1679 = vmatmul.mubr.f32.gmra.mxu1 %v719_v10  ;;  %v1108_v10 = vld [vmem:[#allocation20 + $0x10] sm:$0xff] }
 0x3f2   :  { %v1639_v11 = vpop.f32.mrf.mxu0  ;;  %1681 = vmatprep.mubr.msk.f32.mxu1 %vm2169_vm0, %v2168_v0  ;;  %1796 = vmatpush3.msra.mxu0 %v1108_v10 }
 0x3f3   :  { %1797 = vmatprep.subr.mxu0 %v2168_v0  ;;  %v1107_v11 = vld [vmem:[#allocation20 + $0x8] sm:$0xff] }
 0x3f4   :  { %v724_v12 = vpop.f32.mrf.mxu0  ;;  %1798 = vmatpush3.msra.mxu0 %v1107_v11 }
 0x3f5   :  { %1682 = vmatmul.mubr.f32.gmra.mxu1 %v724_v12  ;;  %1799 = vmatprep.subr.mxu0 %v2168_v0  ;;  %v1106_v12 = vld [vmem:[#allocation20] sm:$0xff] }
 0x3f6   :  { %v1642_v13 = vpop.f32.mrf.mxu0  ;;  %1731 = vmatprep.mubr.msk.f32.mxu1 %vm2169_vm0, %v2168_v0  ;;  %1800 = vmatpush3.msra.mxu0 %v1106_v12 }
 0x3f7   :  { %v1215_v13 = vld [vmem:[#allocation22 + $0x78] sm:$0xff] }
 0x40c   :  { %v906_v14 = vpop.f32.mrf.mxu0 }
 0x40e   :  { %v1718_v15 = vpop.f32.mrf.mxu0 }
 0x40f   :  { %v1213_v15 = vld [vmem:[#allocation22 + $0x68] sm:$0xff] }
 0x410   :  { %v911_v16 = vpop.f32.mrf.mxu0 }
 0x412   :  { %v1721_v17 = vpop.f32.mrf.mxu0 }
 0x413   :  { %v1211_v17 = vld [vmem:[#allocation22 + $0x58] sm:$0xff] }
 0x414   :  { %v916_v18 = vpop.f32.mrf.mxu0 }
 0x416   :  { %v1724_v19 = vpop.f32.mrf.mxu0 }
 0x417   :  { %v1209_v19 = vld [vmem:[#allocation22 + $0x48] sm:$0xff] }
 0x4ad   :  { %v826_v20 = vpop.f32.mrf.mxu1 }
 0x4ae   :  { %v907_v25 = vadd.f32 %v906_v14, %v826_v20  ;;  %v1214_v14 = vld [vmem:[#allocation22 + $0x70] sm:$0xff]  ;;  %v1208_v20 = vld [vmem:[#allocation22 + $0x40] sm:$0xff] }
 0x4af   :  { %v1677_v21 = vpop.f32.mrf.mxu1 }
 0x4b0   :  { %v927_v31 = vadd.f32 %v1323_v26, %v907_v25  ;;  %v1207_v21 = vld [vmem:[#allocation22 + $0x38] sm:$0xff] }
 0x4b1   :  { %v831_v22 = vpop.f32.mrf.mxu1  ;;  %v1203_v25 = vld [vmem:[#allocation22 + $0x18] sm:$0xff] }
 0x4b2   :  { %v912_v23 = vadd.f32 %v911_v16, %v831_v22  ;;  %v930_v35 = vmax.f32 %v927_v31, 0.0  ;;  %v1212_v16 = vld [vmem:[#allocation22 + $0x60] sm:$0xff]  ;;  %v1206_v22 = vld [vmem:[#allocation22 + $0x30] sm:$0xff] }
 0x4b3   :  { %v1680_v24 = vpop.f32.mrf.mxu1  ;;  %v1202_v31 = vld [vmem:[#allocation22 + $0x10] sm:$0xff] }
 0x4b4   :  { %v928_v28 = vadd.f32 %v1323_v26, %v912_v23  ;;  %v933_v38 = vadd.f32 %v930_v35, %v2487_v59  ;;  %v1014_v59 = vld [vmem:[#allocation19 + $0x10] sm:$0xff]  ;;  %v1205_v23 = vld [vmem:[#allocation22 + $0x28] sm:$0xff]  ;;  %v1204_v24 = vld [vmem:[#allocation22 + $0x20] sm:$0xff] }
 0x4b5   :  { %v836_v27 = vpop.f32.mrf.mxu1 }
 0x4b6   :  { %v917_v29 = vadd.f32 %v916_v18, %v836_v27  ;;  %v931_v33 = vmax.f32 %v928_v28, 0.0  ;;  %v1210_v18 = vld [vmem:[#allocation22 + $0x50] sm:$0xff] }
 0x4b7   :  { %v1683_v30 = vpop.f32.mrf.mxu1 }
 0x4b8   :  { %v929_v32 = vadd.f32 %v1323_v26, %v917_v29  ;;  %v934_v37 = vadd.f32 %v931_v33, %v2482_v57  ;;  %v1015_v57 = vld [vmem:[#allocation19 + $0x18] sm:$0xff]  ;;  %v1325_v26 = vld [vmem:[%s2623_s14] ss:$0 sm:$0xff]  ;;  %v1200_v33 = vld [vmem:[#allocation22] sm:$0xff] }
 0x4ba   :  { %v932_v34 = vmax.f32 %v929_v32, 0.0  ;;  %v1201_v32 = vld [vmem:[#allocation22 + $0x8] sm:$0xff] }
 0x4bc   :  { %v935_v36 = vadd.f32 %v932_v34, %v2479_v56  ;;  %v1016_v56 = vld [vmem:[#allocation19 + $0x20] sm:$0xff]  ;;  %v1326_v34 = vld [vmem:[%s2625_s16] ss:$0 sm:$0xff] }
 0x4be   :  { %1726 = vmatpush3.msra.mxu1 %v935_v36 }
 0x4bf   :  { %1727 = vmatprep.subr.mxu1 %v2168_v0 }
 0x4c0   :  { %1728 = vmatpush3.msra.mxu1 %v934_v37 }
 0x4c1   :  { %1729 = vmatprep.subr.mxu1 %v2168_v0 }
 0x4c2   :  { %1730 = vmatpush3.msra.mxu1 %v933_v38 }
 0x4c3   :  { %1732 = vmatmul.mubr.msk.f32.vlgmr.msra.gmra.mxu1 %vm350_vm1, %v936_v39  ;;  %1734 = vmatprep.subr.mxu1 %v2168_v0  ;;  %v1327_v39 = vld [vmem:[%s2627_s18] ss:$0 sm:$0xff] }
 0x4c4   :  { %1735 = vmatpush3.msra.mxu1 %v1027_v40  ;;  %1766 = vmatprep.mubr.msk.f32.mxu1 %vm2169_vm0, %v2168_v0 }
 0x4c5   :  { %1736 = vmatprep.subr.mxu1 %v2168_v0 }
 0x4c6   :  { %1737 = vmatpush3.msra.mxu1 %v1026_v42 }
 0x4c7   :  { %1738 = vmatprep.subr.mxu1 %v2168_v0 }
 0x4c8   :  { %1739 = vmatpush3.msra.mxu1 %v1025_v43 }
 0x4c9   :  { %1740 = vmatprep.subr.mxu1 %v2168_v0 }
 0x4ca   :  { %1741 = vmatpush3.msra.mxu1 %v1024_v44 }
 0x4cb   :  { %1742 = vmatprep.subr.mxu1 %v2168_v0 }
 0x4cc   :  { %1743 = vmatpush3.msra.mxu1 %v1023_v45 }
 0x4cd   :  { %1744 = vmatprep.subr.mxu1 %v2168_v0 }
 0x4ce   :  { %1745 = vmatpush3.msra.mxu1 %v1022_v47 }
 0x4cf   :  { %1746 = vmatprep.subr.mxu1 %v2168_v0 }
 0x4d0   :  { %1747 = vmatpush3.msra.mxu1 %v1021_v48 }
 0x4d1   :  { %1748 = vmatprep.subr.mxu1 %v2168_v0 }
 0x4d2   :  { %1749 = vmatpush3.msra.mxu1 %v1020_v49 }
 0x4d3   :  { %1750 = vmatprep.subr.mxu1 %v2168_v0 }
 0x4d4   :  { %1751 = vmatpush3.msra.mxu1 %v1019_v50 }
 0x4d5   :  { %1752 = vmatprep.subr.mxu1 %v2168_v0 }
 0x4d6   :  { %1753 = vmatpush3.msra.mxu1 %v1018_v53 }
 0x4d7   :  { %1754 = vmatprep.subr.mxu1 %v2168_v0 }
 0x4d8   :  { %1755 = vmatpush3.msra.mxu1 %v1017_v54 }
 0x4d9   :  { %1756 = vmatprep.subr.mxu1 %v2168_v0 }
 0x4da   :  { %1757 = vmatpush3.msra.mxu1 %v1016_v56 }
 0x4db   :  { %1758 = vmatprep.subr.mxu1 %v2168_v0 }
 0x4dc   :  { %1759 = vmatpush3.msra.mxu1 %v1015_v57 }
 0x4dd   :  { %1760 = vmatprep.subr.mxu1 %v2168_v0 }
 0x4de   :  { %1761 = vmatpush3.msra.mxu1 %v1014_v59 }
 0x4df   :  { %1762 = vmatprep.subr.mxu1 %v2168_v0 }
 0x4e0   :  { %1763 = vmatpush3.msra.mxu1 %v1013_v60 }
 0x4e1   :  { %1764 = vmatprep.subr.mxu1 %v2168_v0 }
 0x4e2   :  { %1765 = vmatpush3.msra.mxu1 %v1012_v46 }
 0x4e3   :  { %1804 = vmatprep.subr.mxu1 %v2168_v0 }
 0x583   :  { %v1006_v7 = vpop.f32.mrf.mxu1 }
 0x584   :  { %v1011_v8 = vmul.f32 %v1010_v6, %v1006_v7 }
 0x585   :  { %v1733_v9 = vpop.f32.mrf.mxu1 }
 0x586   :  { %1767 = vmatmul.mubr.f32.vlgmr.msra.gmra.mxu1 %v1011_v8 }
 0x587   :  { %1836 = vmatprep.mubr.msk.f32.mxu1 %vm2169_vm0, %v2168_v0  ;;  %1805 = vmatpush3.msra.mxu1 %v1215_v13 }
 0x588   :  { %1806 = vmatprep.subr.mxu1 %v2168_v0 }
 0x589   :  { %1807 = vmatpush3.msra.mxu1 %v1214_v14 }
 0x58a   :  { %1808 = vmatprep.subr.mxu1 %v2168_v0 }
 0x58b   :  { %1809 = vmatpush3.msra.mxu1 %v1213_v15 }
 0x58c   :  { %1810 = vmatprep.subr.mxu1 %v2168_v0 }
 0x58d   :  { %1811 = vmatpush3.msra.mxu1 %v1212_v16 }
 0x58e   :  { %1812 = vmatprep.subr.mxu1 %v2168_v0 }
 0x58f   :  { %1813 = vmatpush3.msra.mxu1 %v1211_v17 }
 0x590   :  { %1814 = vmatprep.subr.mxu1 %v2168_v0 }
 0x591   :  { %1815 = vmatpush3.msra.mxu1 %v1210_v18 }
 0x592   :  { %1816 = vmatprep.subr.mxu1 %v2168_v0 }
 0x593   :  { %1817 = vmatpush3.msra.mxu1 %v1209_v19 }
 0x594   :  { %1818 = vmatprep.subr.mxu1 %v2168_v0 }
 0x595   :  { %1819 = vmatpush3.msra.mxu1 %v1208_v20 }
 0x596   :  { %1820 = vmatprep.subr.mxu1 %v2168_v0 }
 0x597   :  { %1821 = vmatpush3.msra.mxu1 %v1207_v21 }
 0x598   :  { %1822 = vmatprep.subr.mxu1 %v2168_v0 }
 0x599   :  { %1823 = vmatpush3.msra.mxu1 %v1206_v22 }
 0x59a   :  { %1824 = vmatprep.subr.mxu1 %v2168_v0 }
 0x59b   :  { %1825 = vmatpush3.msra.mxu1 %v1205_v23 }
 0x59c   :  { %1826 = vmatprep.subr.mxu1 %v2168_v0 }
 0x59d   :  { %1827 = vmatpush3.msra.mxu1 %v1204_v24 }
 0x59e   :  { %1828 = vmatprep.subr.mxu1 %v2168_v0 }
 0x59f   :  { %1829 = vmatpush3.msra.mxu1 %v1203_v25 }
 0x5a0   :  { %1830 = vmatprep.subr.mxu1 %v2168_v0 }
 0x5a1   :  { %1831 = vmatpush3.msra.mxu1 %v1202_v31 }
 0x5a2   :  { %1832 = vmatprep.subr.mxu1 %v2168_v0 }
 0x5a3   :  { %1833 = vmatpush3.msra.mxu1 %v1201_v32 }
 0x5a4   :  { %1834 = vmatprep.subr.mxu1 %v2168_v0 }
 0x5a5   :  { %1835 = vmatpush3.msra.mxu1 %v1200_v33 }
 0x646   :  { %v1101_v27 = vpop.f32.mrf.mxu1 }
 0x647   :  { %v1102_v28 = vadd.f32 %v1325_v26, %v1101_v27 }
 0x648   :  { %v1768_v29 = vpop.f32.mrf.mxu1 }
 0x649   :  { %v1105_v30 = vmax.f32 %v1102_v28, 0.0 }
 0x64b   :  { %1802 = vmatmul.mubr.f32.vlgmr.msra.gmra.mxu0 %v1105_v30 }
 0x70b   :  { %v1195_v35 = vpop.f32.mrf.mxu0 }
 0x70c   :  { %v1196_v36 = vadd.f32 %v1326_v34, %v1195_v35 }
 0x70d   :  { %v1803_v37 = vpop.f32.mrf.mxu0 }
 0x70e   :  { %v1199_v38 = vmax.f32 %v1196_v36, 0.0 }
 0x710   :  { %1837 = vmatmul.mubr.f32.vlgmr.msra.gmra.mxu1 %v1199_v38 }
 0x7d0   :  { %v1289_v40 = vpop.f32.mrf.mxu1 }
 0x7d1   :  { %v1290_v42 = vadd.f32 %v1327_v39, %v1289_v40 }
 0x7d2   :  { %v1838_v0 = vpop.f32.mrf.mxu1 }
 0x7d3   :  { %1293 = vst [vmem:[#allocation23] sm:$0xff] %v1290_v42 }
 0x7d4   :  { %2128 = shalt.err (!%p2125_p13)
}
 0x7d5   :  { %1303 = dma.vmem_to_hbm [thread:$0]  %s1301_s3, 128, %s2628_s19, [#allocation4]  }
 0x7d6   :  { %2151 = dma.done.wait [#allocation4], 128  }
 0x7d7   :  { %2152 = vsyncadd [#allocation4], 4294967168 }
 0x7d8   :  { %1307 = vsyncpa [#allocation3], 1 }
 0x7d9   :  { %1308 = vsyncpa [#allocation6], 1 }
 0x7da   :  { %1309 = vsyncpa [#allocation9], 1 }
 0x7db   :  { %1310 = vsyncpa [#allocation12], 1 }
 0x7dc   :  { %1311 = vsyncpa [#allocation15], 1 }
 0x7dd   :  { %1312 = vsyncpa [#allocation18], 1 }
 0x7de   :  { %1313 = vsyncpa [#allocation21], 1 }
 0x7df   :  { %1314 = vsyncpa [#allocation4], 1 }

</bundles_post_ra>
